<compile_context>
chip_gen: v5e
topology: v5e:2x2
jax: 0.10.0
libtpu: 0.0.40
codegen_flags: <defaults>
</compile_context>

<pallas_src>
import math
import numpy as np
import jax
import jax.numpy as jnp
from jax.experimental import pallas as pl
from jax.experimental.pallas import tpu as pltpu


def _kernel(boxes_ref, const_ref, feat_ref, out_ref):
    # boxes_ref: (TM, 4)   const_ref: (2, NFB)   feat_ref/out_ref: (TM, NFB)
    xs = boxes_ref[:, 0:1] + boxes_ref[:, 2:3]      # (TM, 1) == 2 * center_x (out space)
    ys = boxes_ref[:, 1:2] + boxes_ref[:, 3:4]      # (TM, 1) == 2 * center_y (out space)

    inv_dim = const_ref[0:1, :]                     # (1, NFB)  0.5*scale/dim_t, x|y halves
    phase = const_ref[1:2, :]                       # (1, NFB)  0 (even lane) / pi/2 (odd)

    nfb = inv_dim.shape[-1]
    half = nfb // 2
    lane = jax.lax.broadcasted_iota(jnp.int32, (1, nfb), 1)
    c = jnp.where(lane < half, xs, ys)              # (TM, NFB) broadcast select x/y half

    pos = jnp.sin(c * inv_dim + phase)              # sin on even lanes, cos on odd lanes
    out_ref[...] = feat_ref[...] + pos              # single lane-dense (TM, NFB) store


def embfeature_position_embedding(feature, boxes_in_flat, *, image_size,
                                  out_size, num_pos_feats=64,
                                  temperature=10000.0, tile_m=1024):
    """feature: (B, T, N, NFB) f32;  boxes_in_flat: (B*T*N, 4) f32."""
    B, T, N, NFB = feature.shape
    assert num_pos_feats * 2 == NFB
    M = B * T * N
    assert boxes_in_flat.shape == (M, 4)

    feat2d = feature.reshape(M, NFB).astype(jnp.float32)
    boxes = boxes_in_flat.astype(jnp.float32)

    # Host-side constants (float64 math, cast once to f32).
    i = np.arange(num_pos_feats, dtype=np.float64)
    dim_t = temperature ** (2.0 * np.floor(i / 2.0) / num_pos_feats)
    scale_x = float(image_size[1]) / float(out_size[1])
    scale_y = float(image_size[0]) / float(out_size[0])
    inv_x = (0.5 * scale_x) / dim_t
    inv_y = (0.5 * scale_y) / dim_t
    inv_dim_full = np.concatenate([inv_x, inv_y]).astype(np.float32)        # (NFB,)
    phase_half = np.where(np.arange(num_pos_feats) % 2 == 0, 0.0, 0.5 * math.pi)
    phase_full = np.concatenate([phase_half, phase_half]).astype(np.float32)
    consts = jnp.asarray(np.stack([inv_dim_full, phase_full], axis=0))      # (2, NFB)

    # Large lane-dense tiles along M; pad M up to a tile multiple (no divisibility assert).
    tile_m = max(8, (int(tile_m) // 8) * 8)
    tile = min(tile_m, max(8, -(-M // 8) * 8))       # multiple of 8, no bigger than needed
    Mp = -(-M // tile) * tile
    if Mp != M:
        feat2d = jnp.pad(feat2d, ((0, Mp - M), (0, 0)))
        boxes = jnp.pad(boxes, ((0, Mp - M), (0, 0)))   # padded rows: sin(0/pi/2), sliced off

    grid = (Mp // tile,)
    out = pl.pallas_call(
        _kernel,
        out_shape=jax.ShapeDtypeStruct((Mp, NFB), jnp.float32),
        grid_spec=pltpu.PrefetchScalarGridSpec(
            num_scalar_prefetch=0,
            grid=grid,
            in_specs=[
                pl.BlockSpec((tile, 4), lambda m: (m, 0)),
                pl.BlockSpec((2, NFB), lambda m: (0, 0)),
                pl.BlockSpec((tile, NFB), lambda m: (m, 0)),
            ],
            out_specs=pl.BlockSpec((tile, NFB), lambda m: (m, 0)),
        ),
        compiler_params=pltpu.CompilerParams(
            dimension_semantics=("parallel",)),
    )(boxes, consts, feat2d)

    if Mp != M:
        out = out[:M]
    return out.reshape(B, T, N, NFB)


def _reference(feature, boxes, image_size, out_size, num_pos_feats, temperature):
    # float32 end-to-end, mirroring the PyTorch module's f32 forward.
    B, T, N, NFB = feature.shape
    feat = np.asarray(feature, np.float32).reshape(B * T * N, NFB)
    boxes = np.asarray(boxes, np.float32)
    cx = ((boxes[:, 0] + boxes[:, 2]) / 2.0 * (image_size[1] / out_size[1])).astype(np.float32)
    cy = ((boxes[:, 1] + boxes[:, 3]) / 2.0 * (image_size[0] / out_size[0])).astype(np.float32)
    i = np.arange(num_pos_feats, dtype=np.float64)
    dim_t = (temperature ** (2.0 * np.floor(i / 2.0) / num_pos_feats)).astype(np.float32)
    px = cx[:, None] / dim_t
    py = cy[:, None] / dim_t
    px = np.stack((np.sin(px[:, 0::2]), np.cos(px[:, 1::2])), axis=2).reshape(px.shape[0], -1)
    py = np.stack((np.sin(py[:, 0::2]), np.cos(py[:, 1::2])), axis=2).reshape(py.shape[0], -1)
    pos = np.concatenate((px, py), axis=1).astype(np.float32)
    return (pos + feat).reshape(B, T, N, NFB)


if __name__ == "__main__":
    # Small, forward-consistent shapes: NFB = 2 * num_pos_feats.
    B, T, N = 2, 3, 5            # M = 30: exercises the remainder-padding path
    num_pos_feats = 64
    NFB = 2 * num_pos_feats
    image_size = (48.0, 72.0)    # (H, W)
    out_size = (24.0, 36.0)      # (OH, OW)

    key = jax.random.PRNGKey(0)
    kf, kb = jax.random.split(key)
    feature = jax.random.normal(kf, (B, T, N, NFB), dtype=jnp.float32)
    boxes = jax.random.uniform(kb, (B * T * N, 4), dtype=jnp.float32,
                               minval=0.0, maxval=float(out_size[1]))

    out = embfeature_position_embedding(
        feature, boxes,
        image_size=image_size, out_size=out_size,
        num_pos_feats=num_pos_feats, temperature=10000.0)
    out = jax.block_until_ready(out)

    ref = _reference(feature, boxes, image_size, out_size, num_pos_feats, 10000.0)
    assert out.shape == (B, T, N, NFB)
    # f32 trig on O(100)-radian angles: allow ~1e-3 abs slack (actual diff << that).
    assert np.allclose(np.asarray(out), ref, rtol=1e-3, atol=1e-3), "mismatch vs reference"
    print("KERNEL_OK")
</pallas_src>

<mosaic_0001>
module attributes {stable_mosaic.version = 11 : i64} {
  func.func @_kernel(%arg0: i32, %arg1: memref<32x4xf32, #tpu.memory_space<vmem>>, %arg2: memref<2x128xf32, #tpu.memory_space<vmem>>, %arg3: memref<32x128xf32, #tpu.memory_space<vmem>>, %arg4: memref<32x128xf32, #tpu.memory_space<vmem>>) attributes {dimension_semantics = [#tpu.dimension_semantics<parallel>], iteration_bounds = array<i64: 1>, scalar_prefetch = 0 : i64, scratch_operands = 0 : i64, tpu.core_type = #tpu.core_type<tc>, window_params = [{transform_indices = @transform_0, window_bounds = array<i64: 32, 4>}, {pipeline_mode = #tpu.pipeline_mode<synchronous>, transform_indices = @transform_1, window_bounds = array<i64: 2, 128>}, {transform_indices = @transform_2, window_bounds = array<i64: 32, 128>}, {transform_indices = @transform_3, window_bounds = array<i64: 32, 128>}]} {
    %c0 = arith.constant 0 : index
    %c0_0 = arith.constant 0 : index
    %0 = vector.load %arg1[%c0, %c0_0] : memref<32x4xf32, #tpu.memory_space<vmem>>, vector<32x1xf32>
    %c0_1 = arith.constant 0 : index
    %c2 = arith.constant 2 : index
    %1 = vector.load %arg1[%c0_1, %c2] : memref<32x4xf32, #tpu.memory_space<vmem>>, vector<32x1xf32>
    %2 = arith.addf %0, %1 : vector<32x1xf32>
    %c0_2 = arith.constant 0 : index
    %c1 = arith.constant 1 : index
    %3 = vector.load %arg1[%c0_2, %c1] : memref<32x4xf32, #tpu.memory_space<vmem>>, vector<32x1xf32>
    %c0_3 = arith.constant 0 : index
    %c3 = arith.constant 3 : index
    %4 = vector.load %arg1[%c0_3, %c3] : memref<32x4xf32, #tpu.memory_space<vmem>>, vector<32x1xf32>
    %5 = arith.addf %3, %4 : vector<32x1xf32>
    %c0_4 = arith.constant 0 : index
    %c0_5 = arith.constant 0 : index
    %6 = vector.load %arg2[%c0_4, %c0_5] : memref<2x128xf32, #tpu.memory_space<vmem>>, vector<1x128xf32>
    %c1_6 = arith.constant 1 : index
    %c0_7 = arith.constant 0 : index
    %7 = vector.load %arg2[%c1_6, %c0_7] : memref<2x128xf32, #tpu.memory_space<vmem>>, vector<1x128xf32>
    %8 = tpu.iota {dimensions = array<i32: 1>} : vector<1x128xi32>
    %c64_i32 = arith.constant 64 : i32
    %9 = vector.broadcast %c64_i32 : i32 to vector<1x128xi32>
    %10 = arith.cmpi slt, %8, %9 : vector<1x128xi32>
    %11 = vector.shape_cast %10 : vector<1x128xi1> to vector<1x128xi1>
    %12 = vector.broadcast %11 : vector<1x128xi1> to vector<32x128xi1>
    %13 = vector.shape_cast %2 : vector<32x1xf32> to vector<32x1xf32>
    %14 = vector.broadcast %13 : vector<32x1xf32> to vector<32x128xf32>
    %15 = vector.shape_cast %5 : vector<32x1xf32> to vector<32x1xf32>
    %16 = vector.broadcast %15 : vector<32x1xf32> to vector<32x128xf32>
    %17 = arith.select %12, %14, %16 : vector<32x128xi1>, vector<32x128xf32>
    %18 = vector.broadcast %6 : vector<1x128xf32> to vector<32x128xf32>
    %19 = arith.mulf %17, %18 : vector<32x128xf32>
    %20 = vector.broadcast %7 : vector<1x128xf32> to vector<32x128xf32>
    %21 = arith.addf %19, %20 : vector<32x128xf32>
    %22 = math.sin %21 : vector<32x128xf32>
    %c0_8 = arith.constant 0 : index
    %c0_9 = arith.constant 0 : index
    %23 = vector.load %arg3[%c0_8, %c0_9] : memref<32x128xf32, #tpu.memory_space<vmem>>, vector<32x128xf32>
    %24 = arith.addf %23, %22 : vector<32x128xf32>
    %c0_10 = arith.constant 0 : index
    %c0_11 = arith.constant 0 : index
    %25 = vector.load %arg4[%c0_10, %c0_11] : memref<32x128xf32, #tpu.memory_space<vmem>>, vector<32x128xf32>
    tpu.vector_store %arg4[%c0_10, %c0_11], %24 {strides = array<i32>} : memref<32x128xf32, #tpu.memory_space<vmem>>, vector<32x128xf32>,
    return
  }
  func.func @transform_0(%arg0: i32) -> (i32, i32) {
    %c0_i32 = arith.constant 0 : i32
    %c0_i32_0 = arith.constant 0 : i32
    return %arg0, %c0_i32 : i32, i32
  }
  func.func @transform_1(%arg0: i32) -> (i32, i32) {
    %c0_i32 = arith.constant 0 : i32
    %c0_i32_0 = arith.constant 0 : i32
    %c0_i32_1 = arith.constant 0 : i32
    return %c0_i32, %c0_i32_0 : i32, i32
  }
  func.func @transform_2(%arg0: i32) -> (i32, i32) {
    %c0_i32 = arith.constant 0 : i32
    %c0_i32_0 = arith.constant 0 : i32
    return %arg0, %c0_i32 : i32, i32
  }
  func.func @transform_3(%arg0: i32) -> (i32, i32) {
    %c0_i32 = arith.constant 0 : i32
    %c0_i32_0 = arith.constant 0 : i32
    return %arg0, %c0_i32 : i32, i32
  }
}

</mosaic_0001>

<bundles_post_ra>
// kernel: tpu_custom_call.1
= control target key start
LH: loop header
LB: loop body
LE: loop exit
PB: predicated region body
PF: predicated region fallthrough
CT: control target
= control target key end

     0   :  { %s804_s16 = smov 126   ;;  %s1284_s0 = inlined_call_operand.vmem [shape: f32[32,4], index: 0, kind: input, shape index: {}]   ;;  %s1285_s1 = inlined_call_operand.vmem [shape: f32[2,128], index: 1, kind: input, shape index: {}]   ;;  %s1286_s2 = inlined_call_operand.vmem [shape: f32[32,128], index: 2, kind: input, shape index: {}]   ;;  %s1287_s3 = inlined_call_operand.hbm [shape: f32[32,128], index: 3, kind: output, shape index: {}]  }
   0x1   :  { %v17_v0 = vld [vmem:[%s1284_s0 + $0x10] sm:$0xff]  ;;  %v15_v1 = vld [vmem:[%s1284_s0] sm:$0xff] }
   0x2   :  { %27 = vrot.lane.b32.xlu1 %v17_v0, %s804_s16  ;;  %23 = vrot.lane.b32.xlu0 %v15_v1, %s804_s16 }
   0x3   :  { %8 = vsyncpa [#allocation3], 0  ;;  %v18_v2 = vld [vmem:[%s1284_s0 + $0x18] sm:$0xff]  ;;  %v16_v3 = vld [vmem:[%s1284_s0 + $0x8] sm:$0xff]  ;;  %v805_v4 = vmov 0   ;;  %v806_v13 = vmov 1   ;;  %v41_v15 = vlaneseq }
   0x4   :  { %771 = vset.pattern.permute.xlu0 %v805_v4  ;;  %770 = vset.pattern.permute.xlu2 %v805_v4  ;;  %v859_v18 = vld [vmem:[%s1285_s1] ss:$0 sm:$0xff]  ;;  %v864_v19 = vld [vmem:[%s1285_s1 + $0x1] ss:$0 sm:$0xff]  ;;  %v807_v49 = vmov 683565275  }
   0x5   :  { %772 = vset.pattern.permute.xlu1 %v805_v4  ;;  %v853_v17 = vand.u32 127, %v41_v15  ;;  %v808_v51 = vmov 2475754826   ;;  %v809_v53 = vmov 2131351028   ;;  %s813_s29 = smov [#allocation2]  }
   0x6   :  { %v810_v58 = vmov 2102212464   ;;  %v811_v61 = vmov 920167782   ;;  %s732_s30 = sshll.u32 %s813_s29, 4  ;;  %s734_s6 = sshll.u32 %s1287_s3, 4  ;;  %s733_s30 = int_to_ptr.vmem [resolvable:$true] %s732_s30  ;;  %s735_s6 = int_to_ptr.hbm [resolvable:$true] %s734_s6 }
   0x7   :  { %vm43_vm0 = vcmp.lt.s32.totalorder %v853_v17, 64  ;;  %s814_s9 = smov 128   ;;  %s815_s10 = smov 8  }
   0xa   :  { %29 = vrot.lane.b32.xlu1 %v18_v2, %s804_s16  ;;  %25 = vrot.lane.b32.xlu0 %v16_v3, %s804_s16 }
  0x74   :  { %v28_v5 = vpop.permute.xlu1 %27  ;;  %v24_v6 = vpop.permute.xlu0 %23 }
  0x75   :  { %v37_v7 = vadd.f32 %v28_v5, %v17_v0  ;;  %v35_v8 = vadd.f32 %v24_v6, %v15_v1  ;;  %v812_v0 = vmov 1326507024  }
  0x77   :  { %58 = vperm.xlu0 %771, %v37_v7   ;;  %48 = vperm.xlu2 %770, %v35_v8  }
  0x7c   :  { %v30_v9 = vpop.permute.xlu1 %29  ;;  %v26_v10 = vpop.permute.xlu0 %25 }
  0x7d   :  { %v38_v11 = vadd.f32 %v30_v9, %v18_v2  ;;  %v36_v12 = vadd.f32 %v26_v10, %v16_v3 }
  0x7f   :  { %63 = vperm.xlu1 %772, %v38_v11   ;;  %775 = vset.pattern.permute.xlu0 %v806_v13 }
  0x80   :  { %53 = vperm.xlu2 %770, %v36_v12   ;;  %79 = vperm.xlu0 %775, %v38_v11  }
  0x87   :  { %774 = vset.pattern.permute.xlu1 %v806_v13 }
  0x88   :  { %773 = vset.pattern.permute.xlu2 %v806_v13  ;;  %71 = vperm.xlu1 %774, %v36_v12  }
  0x89   :  { %67 = vperm.xlu2 %773, %v35_v8  }
  0x91   :  { %75 = vperm.xlu2 %773, %v37_v7  }
  0xd1   :  { %v49_v14 = vpop.permute.xlu2 %48 }
  0xda   :  { %v851_v16 = vpop.permute.xlu2 %53 }
  0xe3   :  { %v68_v20 = vpop.permute.xlu2 %67 }
  0xe4   :  { %v82_v21 = vsel %vm43_vm0, %v49_v14, %v68_v20 }
  0xe5   :  { %v87_v22 = vmul.f32 %v859_v18, %v82_v21 }
  0xe7   :  { %v870_v23 = vadd.f32 %v864_v19, %v87_v22 }
  0xe9   :  { %v96_v24 = vand.u32 2147483647, %v870_v23  ;;  %v99_v25 = vand.u32 2139095040, %v870_v23  ;;  %v59_v26 = vpop.permute.xlu0 %58 }
  0xeb   :  { %v100_v27 = vshrl.u32 %v99_v25, 23  ;;  %v103_v28 = vand.u32 8388607, %v96_v24  ;;  %v76_v29 = vpop.permute.xlu2 %75 }
  0xec   :  { %v84_v30 = vsel %vm43_vm0, %v59_v26, %v76_v29 }
  0xed   :  { %v746_v31 = vadd.s32 4294967169, %v100_v27  ;;  %v104_v32 = vor.u32 8388608, %v103_v28  ;;  %v89_v33 = vmul.f32 %v859_v18, %v84_v30 }
  0xef   :  { %v106_v34 = vadd.s32 1, %v746_v31  ;;  %v880_v35 = vadd.f32 %v864_v19, %v89_v33  ;;  %v882_v36 = vshll.u32 %v104_v32, 8 }
  0xf1   :  { %vm107_vm1 = vcmp.gt.s32.totalorder %v106_v34, 0  ;;  %v406_v37 = vand.u32 2147483647, %v880_v35  ;;  %v409_v39 = vand.u32 2139095040, %v880_v35  ;;  %v64_v41 = vpop.permute.xlu1 %63  ;;  %v887_v44 = vand.u32 65535, %v882_v36 }
  0xf2   :  { %v108_v38 = vsel %vm107_vm1, %v106_v34, 0  ;;  %v80_v42 = vpop.permute.xlu0 %79  ;;  %v146_v46 = vshrl.u32 %v882_v36, 16  ;;  %vm98_vm1 = vcmp.lt.s32.totalorder %v870_v23, 0 }
  0xf3   :  { %v110_v40 = vand.u32 31, %v108_v38  ;;  %v109_v43 = vshrl.u32 %v108_v38, 5  ;;  %v410_v47 = vshrl.u32 %v409_v39, 23  ;;  %v892_v48 = vand.u32 8388607, %v406_v37 }
  0xf4   :  { %v85_v55 = vsel %vm43_vm0, %v64_v41, %v80_v42 }
  0xf5   :  { %v111_v45 = vsub.s32 32, %v110_v40  ;;  %v113_v50 = vshll.u32 %v807_v49, %v110_v40  ;;  %v116_v52 = vshll.u32 %v808_v51, %v110_v40  ;;  %v119_v54 = vshll.u32 %v809_v53, %v110_v40 }
  0xf6   :  { %v122_v60 = vshll.u32 %v810_v58, %v110_v40  ;;  %v125_v63 = vshll.u32 %v811_v61, %v110_v40  ;;  %vm128_vm2 = vcmp.lt.s32.totalorder %v109_v43, 1  ;;  %v752_v6 = vadd.s32 4294967169, %v410_v47 }
  0xf7   :  { %v114_v56 = vshrl.u32 %v808_v51, %v111_v45  ;;  %v117_v57 = vshrl.u32 %v809_v53, %v111_v45  ;;  %v120_v59 = vshrl.u32 %v810_v58, %v111_v45  ;;  %v123_v62 = vshrl.u32 %v811_v61, %v111_v45 }
  0xf8   :  { %v126_v1 = vshrl.u32 %v812_v0, %v111_v45  ;;  %vm131_vm3 = vcmp.lt.s32.totalorder %v109_v43, 4  ;;  %v90_v9 = vmul.f32 %v859_v18, %v85_v55  ;;  %v112_v10 = vshrl.u32 %v807_v49, %v111_v45 }
  0xf9   :  { %v115_v2 = vor.u32 %v114_v56, %v113_v50  ;;  %v118_v3 = vor.u32 %v117_v57, %v116_v52  ;;  %v121_v5 = vor.u32 %v120_v59, %v119_v54  ;;  %v124_v7 = vor.u32 %v123_v62, %v122_v60 }
  0xfa   :  { %v127_v8 = vor.u32 %v126_v1, %v125_v63  ;;  %vm130_vm4 = vcmp.lt.s32.totalorder %v109_v43, 3  ;;  %v416_v20 = vadd.s32 1, %v752_v6  ;;  %vm129_vm5 = vcmp.lt.s32.totalorder %v109_v43, 2 }
  0xfb   :  { %v133_v11 = vsel %vm131_vm3, %v121_v5, 2102212464  ;;  %v136_v12 = vsel %vm128_vm2, %v115_v2, %v118_v3  ;;  %v140_v13 = vsel %vm128_vm2, %v118_v3, %v121_v5  ;;  %v137_v14 = vsel %vm131_vm3, %v124_v7, 920167782 }
  0xfc   :  { %v141_v15 = vsel %vm131_vm3, %v127_v8, 1326507024  ;;  %v132_v21 = vsel %vm128_vm2, %v112_v10, %v115_v2  ;;  %v138_v22 = vsel %vm130_vm4, %v121_v5, %v137_v14  ;;  %v134_v26 = vsel %vm130_vm4, %v118_v3, %v133_v11 }
  0xfd   :  { %v142_v25 = vsel %vm130_vm4, %v124_v7, %v141_v15  ;;  %v139_v27 = vsel %vm129_vm5, %v136_v12, %v138_v22  ;;  %vm417_vm6 = vcmp.gt.s32.totalorder %v416_v20, 0  ;;  %v414_v33 = vor.u32 8388608, %v892_v48 }
  0xfe   :  { %v143_v28 = vsel %vm129_vm5, %v140_v13, %v142_v25  ;;  %v169_v31 = vand.u32 65535, %v139_v27  ;;  %v170_v32 = vshrl.u32 %v139_v27, 16  ;;  %v913_v34 = vadd.f32 %v864_v19, %v90_v9 }
  0xff   :  { %v147_v29 = vand.u32 65535, %v143_v28  ;;  %v148_v30 = vshrl.u32 %v143_v28, 16  ;;  %v915_v38 = vsel %vm129_vm5, %v132_v21, %v134_v26  ;;  %v418_v41 = vsel %vm417_vm6, %v416_v20, 0 }
 0x100   :  { %v172_v45 = vmul.u32 %v170_v32, %v887_v44  ;;  %v173_v47 = vmul.u32 %v169_v31, %v146_v46  ;;  %v171_v54 = vmul.u32 %v169_v31, %v887_v44  ;;  %v174_v48 = vmul.u32 %v170_v32, %v146_v46 }
 0x101   :  { %v150_v39 = vmul.u32 %v148_v30, %v887_v44  ;;  %v151_v40 = vmul.u32 %v147_v29, %v146_v46  ;;  %v149_v42 = vmul.u32 %v147_v29, %v887_v44  ;;  %v152_v43 = vmul.u32 %v148_v30, %v146_v46 }
 0x102   :  { %v175_v57 = vshll.u32 %v172_v45, 16  ;;  %v176_v59 = vshrl.u32 %v172_v45, 16  ;;  %v177_v62 = vshll.u32 %v173_v47, 16  ;;  %v420_v63 = vand.u32 31, %v418_v41 }
 0x103   :  { %v153_v50 = vshll.u32 %v150_v39, 16  ;;  %v154_v52 = vshrl.u32 %v150_v39, 16  ;;  %v155_v55 = vshll.u32 %v151_v40, 16  ;;  %v156_v56 = vshrl.u32 %v151_v40, 16 }
 0x104   :  { %v178_v2 = vshrl.u32 %v173_v47, 16  ;;  %vm179_vm8 = vc.u32 %v171_v54, %v175_v57  ;;  %v181_v3 = vadd.s32 %v175_v57, %v171_v54  ;;  %v923_v7 = vsub.s32 32, %v420_v63 }
 0x105   :  { %vm157_vm7 = vc.u32 %v149_v42, %v153_v50  ;;  %v159_v60 = vadd.s32 %v153_v50, %v149_v42  ;;  %v180_v6 = vsel %vm179_vm8, 1, %v805_v4  ;;  %v926_v8 = vshrl.u32 %v418_v41, 5 }
 0x106   :  { %v158_v1 = vsel %vm157_vm7, 1, %v805_v4  ;;  %v182_v46 = vadd.s32 %v180_v6, %v174_v48  ;;  %vm183_vm10 = vc.u32 %v181_v3, %v177_v62  ;;  %v929_v11 = vadd.s32 %v181_v3, %v177_v62 }
 0x107   :  { %v160_v5 = vadd.s32 %v158_v1, %v152_v43  ;;  %vm161_vm9 = vc.u32 %v159_v60, %v155_v55  ;;  %v184_v10 = vsel %vm183_vm10, 1, %v805_v4  ;;  %v423_v12 = vshll.u32 %v807_v49, %v420_v63 }
 0x108   :  { %v162_v44 = vsel %vm161_vm9, 1, %v805_v4  ;;  %v186_v13 = vadd.s32 %v184_v10, %v182_v46  ;;  %v424_v14 = vshrl.u32 %v808_v51, %v923_v7  ;;  %v426_v15 = vshll.u32 %v808_v51, %v420_v63 }
 0x109   :  { %v164_v9 = vadd.s32 %v162_v44, %v160_v5  ;;  %v427_v20 = vshrl.u32 %v809_v53, %v923_v7  ;;  %v429_v22 = vshll.u32 %v809_v53, %v420_v63  ;;  %v430_v25 = vshrl.u32 %v810_v58, %v923_v7 }
 0x10a   :  { %v432_v26 = vshll.u32 %v810_v58, %v420_v63  ;;  %v187_v27 = vadd.s32 %v186_v13, %v176_v59  ;;  %v941_v28 = vor.u32 %v424_v14, %v423_v12  ;;  %v433_v30 = vshrl.u32 %v811_v61, %v923_v7 }
 0x10b   :  { %v165_v21 = vadd.s32 %v164_v9, %v154_v52  ;;  %v943_v29 = vor.u32 %v427_v20, %v426_v15  ;;  %v431_v32 = vor.u32 %v430_v25, %v429_v22  ;;  %v435_v39 = vshll.u32 %v811_v61, %v420_v63 }
 0x10c   :  { %v436_v40 = vshrl.u32 %v812_v0, %v923_v7  ;;  %v188_v41 = vadd.s32 %v187_v27, %v178_v2  ;;  %v434_v42 = vor.u32 %v433_v30, %v432_v26  ;;  %vm438_vm12 = vcmp.lt.s32.totalorder %v926_v8, 1 }
 0x10d   :  { %v947_v31 = vadd.s32 %v165_v21, %v156_v56  ;;  %v955_v45 = vshll.u32 %v414_v33, 8  ;;  %v189_v47 = vmul.u32 %v882_v36, %v915_v38  ;;  %vm441_vm13 = vcmp.lt.s32.totalorder %v926_v8, 4 }
 0x10e   :  { %v437_v43 = vor.u32 %v436_v40, %v435_v39  ;;  %v192_v50 = vadd.s32 1, %v188_v41  ;;  %v446_v52 = vsel %vm438_vm12, %v941_v28, %v943_v29  ;;  %vm440_vm14 = vcmp.lt.s32.totalorder %v926_v8, 3 }
 0x10f   :  { %vm191_vm11 = vc.u32 %v947_v31, %v929_v11  ;;  %v447_v54 = vsel %vm441_vm13, %v434_v42, 920167782  ;;  %v450_v33 = vsel %vm438_vm12, %v943_v29, %v431_v32  ;;  %vm439_vm15 = vcmp.lt.s32.totalorder %v926_v8, 2 }
 0x110   :  { %v451_v36 = vsel %vm441_vm13, %v437_v43, 1326507024  ;;  %v193_v38 = vsel %vm191_vm11, %v192_v50, %v188_v41  ;;  %v448_v48 = vsel %vm440_vm14, %v431_v32, %v447_v54  ;;  %v455_v60 = vand.u32 65535, %v955_v45 }
 0x111   :  { %v452_v55 = vsel %vm440_vm14, %v434_v42, %v451_v36  ;;  %v194_v56 = vadd.s32 %v193_v38, %v189_v47  ;;  %v449_v57 = vsel %vm439_vm15, %v446_v52, %v448_v48  ;;  %v456_v62 = vshrl.u32 %v955_v45, 16 }
 0x112   :  { %v453_v59 = vsel %vm439_vm15, %v450_v33, %v452_v55  ;;  %v480_v2 = vshrl.u32 %v449_v57, 16  ;;  %v479_v5 = vand.u32 65535, %v449_v57  ;;  %v443_v27 = vsel %vm441_vm13, %v431_v32, 2102212464 }
 0x113   :  { %v457_v63 = vand.u32 65535, %v453_v59  ;;  %v458_v1 = vshrl.u32 %v453_v59, 16  ;;  %v195_v3 = vadd.s32 536870912, %v194_v56  ;;  %vm989_vm5 = vcmp.le.f32.partialorder %v96_v24, 0.7853982  ;;  %v72_v59 = vpop.permute.xlu1 %71 }
 0x114   :  { %v482_v9 = vmul.u32 %v480_v2, %v455_v60  ;;  %v483_v15 = vmul.u32 %v479_v5, %v456_v62  ;;  %v481_v25 = vmul.u32 %v479_v5, %v455_v60  ;;  %v484_v41 = vmul.u32 %v480_v2, %v456_v62 }
 0x115   :  { %v460_v6 = vmul.u32 %v458_v1, %v455_v60  ;;  %v461_v44 = vmul.u32 %v457_v63, %v456_v62  ;;  %v196_v46 = vshrl.u32 %v195_v3, 30  ;;  %v459_v10 = vmul.u32 %v457_v63, %v455_v60 }
 0x116   :  { %v462_v14 = vmul.u32 %v458_v1, %v456_v62  ;;  %v485_v20 = vshll.u32 %v482_v9, 16  ;;  %v487_v50 = vshll.u32 %v483_v15, 16  ;;  %v564_v33 = vand.u32 2139095040, %v913_v34 }
 0x117   :  { %v463_v12 = vshll.u32 %v460_v6, 16  ;;  %v197_v13 = vshll.u32 %v196_v46, 30  ;;  %v465_v21 = vshll.u32 %v461_v44, 16  ;;  %v464_v30 = vshrl.u32 %v460_v6, 16 }
 0x118   :  { %vm489_vm4 = vc.u32 %v481_v25, %v485_v20  ;;  %v491_v54 = vadd.s32 %v485_v20, %v481_v25  ;;  %v220_v38 = vsub.s32 4, %v196_v46  ;;  %v422_v48 = vshrl.u32 %v807_v49, %v923_v7 }
 0x119   :  { %vm467_vm2 = vc.u32 %v459_v10, %v463_v12  ;;  %v469_v22 = vadd.s32 %v463_v12, %v459_v10  ;;  %v198_v26 = vsub.s32 %v194_v56, %v197_v13  ;;  %v490_v32 = vsel %vm489_vm4, 1, %v805_v4 }
 0x11a   :  { %v468_v39 = vsel %vm467_vm2, 1, %v805_v4  ;;  %v492_v24 = vadd.s32 %v490_v32, %v484_v41  ;;  %vm493_vm7 = vc.u32 %v491_v54, %v487_v50  ;;  %v561_v57 = vand.u32 2147483647, %v913_v34 }
 0x11b   :  { %v470_v40 = vadd.s32 %v468_v39, %v462_v14  ;;  %vm471_vm3 = vc.u32 %v469_v22, %v465_v21  ;;  %vm199_vm6 = vcmp.lt.s32.totalorder %v198_v26, 0  ;;  %v200_v43 = vsub.s32 0, %v198_v26 }
 0x11c   :  { %v472_v47 = vsel %vm471_vm3, 1, %v805_v4  ;;  %v442_v60 = vsel %vm438_vm12, %v422_v48, %v941_v28  ;;  %v444_v62 = vsel %vm440_vm14, %v943_v29, %v443_v27  ;;  %v466_v63 = vshrl.u32 %v461_v44, 16 }
 0x11d   :  { %v474_v52 = vadd.s32 %v472_v47, %v470_v40  ;;  %v201_v36 = vsel %vm199_vm6, %v200_v43, %v198_v26  ;;  %v494_v1 = vsel %vm493_vm7, 1, %v805_v4  ;;  %v486_v7 = vshrl.u32 %v482_v9, 16 }
 0x11e   :  { %v202_v55 = vclz %v201_v36  ;;  %v496_v3 = vadd.s32 %v494_v1, %v492_v24  ;;  %v565_v5 = vshrl.u32 %v564_v33, 23  ;;  %v190_v6 = vadd.s32 %v929_v11, %v947_v31 }
 0x11f   :  { %v475_v56 = vadd.s32 %v474_v52, %v464_v30  ;;  %v221_v10 = vsel %vm98_vm1, %v220_v38, %v196_v46  ;;  %v83_v28 = vsel %vm43_vm0, %v851_v16, %v72_v59  ;;  %v445_v29 = vsel %vm439_vm15, %v442_v60, %v444_v62 }
 0x120   :  { %v747_v2 = vadd.s32 4294967294, %v202_v55  ;;  %v488_v44 = vshrl.u32 %v483_v15, 16  ;;  %v497_v13 = vadd.s32 %v496_v3, %v486_v7  ;;  %v495_v14 = vadd.s32 %v491_v54, %v487_v50 }
 0x121   :  { %v476_v12 = vadd.s32 %v475_v56, %v466_v63  ;;  %v755_v20 = vadd.s32 4294967169, %v565_v5  ;;  %v88_v21 = vmul.f32 %v859_v18, %v83_v28  ;;  %v223_v46 = vsel %vm989_vm5, 0, %v221_v10 }
 0x122   :  { %vm748_vm8 = vcmp.lt.s32.totalorder %v747_v2, 0  ;;  %v498_v22 = vadd.s32 %v497_v13, %v488_v44  ;;  %v568_v16 = vand.u32 8388607, %v561_v57  ;;  %v499_v18 = vmul.u32 %v955_v45, %v445_v29 }
 0x123   :  { %v205_v9 = vsel %vm748_vm8, 0, %v747_v2  ;;  %vm501_vm9 = vc.u32 %v476_v12, %v495_v14  ;;  %v571_v17 = vadd.s32 1, %v755_v20  ;;  %v1021_v8 = vadd.f32 %v864_v19, %v88_v21 }
 0x124   :  { %v206_v11 = vsub.s32 32, %v205_v9  ;;  %v210_v31 = vsub.s32 4294967266, %v205_v9  ;;  %v207_v15 = vshll.u32 %v198_v26, %v205_v9  ;;  %v502_v30 = vadd.s32 1, %v498_v22 }
 0x125   :  { %vm572_vm0 = vcmp.gt.s32.totalorder %v571_v17, 0  ;;  %v240_v47 = vadd.s32 3, %v223_v46  ;;  %v569_v54 = vor.u32 8388608, %v568_v16  ;;  %vm408_vm10 = vcmp.lt.s32.totalorder %v880_v35, 0 }
 0x126   :  { %v208_v25 = vshrl.u32 %v190_v6, %v206_v11  ;;  %v211_v27 = vadd.s32 127, %v210_v31  ;;  %v503_v41 = vsel %vm501_vm9, %v502_v30, %v498_v22  ;;  %v573_v43 = vsel %vm572_vm0, %v571_v17, 0 }
 0x127   :  { %v504_v50 = vadd.s32 %v503_v41, %v499_v18  ;;  %v575_v52 = vand.u32 31, %v573_v43  ;;  %v1026_v38 = vand.u32 3, %v240_v47  ;;  %v1035_v60 = vshll.u32 %v569_v54, 8 }
 0x128   :  { %v209_v39 = vor.u32 %v208_v25, %v207_v15  ;;  %v212_v40 = vshll.u32 %v211_v27, 23  ;;  %v1041_v3 = vshrl.u32 %v573_v43, 5  ;;  %v500_v9 = vadd.s32 %v495_v14, %v476_v12 }
 0x129   :  { %v505_v33 = vadd.s32 536870912, %v504_v50  ;;  %v1024_v36 = vsub.s32 32, %v575_v52  ;;  %v578_v56 = vshll.u32 %v807_v49, %v575_v52  ;;  %v581_v63 = vshll.u32 %v808_v51, %v575_v52 }
 0x12a   :  { %v213_v32 = vor.u32 4788187, %v212_v40  ;;  %v216_v26 = vcvt.s32.f32 %v209_v39  ;;  %v587_v2 = vshll.u32 %v810_v58, %v575_v52  ;;  %v584_v5 = vshll.u32 %v809_v53, %v575_v52 }
 0x12b   :  { %v506_v48 = vshrl.u32 %v505_v33, 30  ;;  %v579_v45 = vshrl.u32 %v808_v51, %v1024_v36  ;;  %v582_v24 = vshrl.u32 %v809_v53, %v1024_v36  ;;  %v588_v59 = vshrl.u32 %v811_v61, %v1024_v36 }
 0x12c   :  { %v214_v19 = vand.u32 2147483647, %v213_v32  ;;  %v585_v1 = vshrl.u32 %v810_v58, %v1024_v36  ;;  %v591_v6 = vshrl.u32 %v812_v0, %v1024_v36  ;;  %v590_v20 = vshll.u32 %v811_v61, %v575_v52 }
 0x12d   :  { %v507_v62 = vshll.u32 %v506_v48, 30  ;;  %v1048_v28 = vor.u32 %v579_v45, %v578_v56  ;;  %v1050_v29 = vor.u32 %v582_v24, %v581_v63  ;;  %v589_v44 = vor.u32 %v588_v59, %v587_v2 }
 0x12e   :  { %v217_v55 = vmul.f32 %v216_v26, %v214_v19  ;;  %v1057_v21 = vand.u32 65535, %v1035_v60  ;;  %v586_v46 = vor.u32 %v585_v1, %v584_v5  ;;  %vm593_vm12 = vcmp.lt.s32.totalorder %v1041_v3, 1 }
 0x12f   :  { %v1046_v10 = vsub.s32 %v504_v50, %v507_v62  ;;  %vm596_vm13 = vcmp.lt.s32.totalorder %v1041_v3, 4  ;;  %v254_v12 = vand.u32 2139095040, %v1021_v8  ;;  %v592_v16 = vor.u32 %v591_v6, %v590_v20 }
 0x130   :  { %v218_v7 = vxor.u32 2147483648, %v217_v55  ;;  %v601_v42 = vsel %vm593_vm12, %v1048_v28, %v1050_v29  ;;  %v602_v17 = vsel %vm596_vm13, %v589_v44, 920167782  ;;  %vm595_vm14 = vcmp.lt.s32.totalorder %v1041_v3, 3 }
 0x131   :  { %vm509_vm11 = vcmp.lt.s32.totalorder %v1046_v10, 0  ;;  %v510_v31 = vsub.s32 0, %v1046_v10  ;;  %v530_v30 = vsub.s32 4, %v506_v48  ;;  %vm594_vm15 = vcmp.lt.s32.totalorder %v1041_v3, 2 }
 0x132   :  { %v219_v13 = vsel %vm98_vm1, %v218_v7, %v217_v55  ;;  %v603_v18 = vsel %vm595_vm14, %v586_v46, %v602_v17  ;;  %v611_v39 = vshrl.u32 %v1035_v60, 16  ;;  %v605_v50 = vsel %vm593_vm12, %v1050_v29, %v586_v46 }
 0x133   :  { %v1062_v11 = vsel %vm989_vm5, %v870_v23, %v219_v13  ;;  %v511_v14 = vsel %vm509_vm11, %v510_v31, %v1046_v10  ;;  %v604_v47 = vsel %vm594_vm15, %v601_v42, %v603_v18  ;;  %v606_v52 = vsel %vm596_vm13, %v592_v16, 1326507024 }
 0x134   :  { %v224_v22 = vmul.f32 %v1062_v11, %v1062_v11  ;;  %v512_v27 = vclz %v511_v14  ;;  %v635_v32 = vshrl.u32 %v604_v47, 16  ;;  %v1090_v54 = vshrl.u32 %v254_v12, 23 }
 0x135   :  { %v607_v26 = vsel %vm595_vm14, %v589_v44, %v606_v52  ;;  %v1096_v24 = vsel %vm408_vm10, %v530_v30, %v506_v48  ;;  %v1100_v55 = vshrl.u32 %v807_v49, %v1024_v36  ;;  %v634_v1 = vand.u32 65535, %v604_v47 }
 0x136   :  { %v225_v15 = vmul.f32 -0.001358992, %v224_v22  ;;  %v232_v25 = vmul.f32 -0.00019511016, %v224_v22  ;;  %v753_v43 = vadd.s32 4294967294, %v512_v27  ;;  %v608_v56 = vsel %vm594_vm15, %v605_v50, %v607_v26 }
 0x137   :  { %vm243_vm2 = vcmp.eq.s32.totalorder %v1026_v38, 0  ;;  %vm246_vm3 = vcmp.eq.s32.totalorder %v1026_v38, 2  ;;  %v598_v48 = vsel %vm596_vm13, %v586_v46, 2102212464  ;;  %v612_v7 = vand.u32 65535, %v608_v56 }
 0x138   :  { %v226_v40 = vadd.f32 0.041655596, %v225_v15  ;;  %v233_v41 = vadd.f32 0.008332121, %v232_v25  ;;  %vm754_vm1 = vcmp.lt.s32.totalorder %v753_v43, 0  ;;  %v613_v5 = vshrl.u32 %v608_v56, 16 }
 0x139   :  { %v515_v45 = vsel %vm754_vm1, 0, %v753_v43  ;;  %vm242_vm4 = vcmp.lt.s32.totalorder %v1026_v38, 2  ;;  %v1110_v13 = vmul.u32 %v635_v32, %v1057_v21  ;;  %vm239_vm5 = vweird.f32 %v870_v23 }
 0x13a   :  { %v227_v33 = vmul.f32 %v226_v40, %v224_v22  ;;  %v234_v19 = vmul.f32 %v233_v41, %v224_v22  ;;  %v516_v63 = vsub.s32 32, %v515_v45  ;;  %v520_v2 = vsub.s32 4294967266, %v515_v45 }
 0x13b   :  { %v517_v20 = vshll.u32 %v1046_v10, %v515_v45  ;;  %v615_v12 = vmul.u32 %v613_v5, %v1057_v21  ;;  %v616_v14 = vmul.u32 %v612_v7, %v611_v39  ;;  %v636_v42 = vmul.u32 %v634_v1, %v1057_v21 }
 0x13c   :  { %v228_v59 = vadd.f32 -0.4999988, %v227_v33  ;;  %v235_v62 = vadd.f32 -0.16666654, %v234_v19  ;;  %v518_v44 = vshrl.u32 %v500_v9, %v516_v63  ;;  %v521_v31 = vadd.s32 127, %v520_v2 }
 0x13d   :  { %v1116_v17 = vmul.u32 %v634_v1, %v611_v39  ;;  %v614_v9 = vmul.u32 %v612_v7, %v1057_v21  ;;  %v618_v25 = vshll.u32 %v615_v12, 16  ;;  %v617_v18 = vmul.u32 %v613_v5, %v611_v39 }
 0x13e   :  { %v229_v6 = vmul.f32 %v228_v59, %v224_v22  ;;  %v236_v36 = vmul.f32 %v235_v62, %v224_v22  ;;  %v519_v22 = vor.u32 %v518_v44, %v517_v20  ;;  %v522_v15 = vshll.u32 %v521_v31, 23 }
 0x13f   :  { %v620_v10 = vshll.u32 %v616_v14, 16  ;;  %vm1122_vm6 = vcmp.le.f32.partialorder %v406_v37, 0.7853982  ;;  %vm622_vm7 = vc.u32 %v614_v9, %v618_v25  ;;  %v624_v43 = vadd.s32 %v618_v25, %v614_v9  ;;  %v716_v37 = vld [vmem:[%s1286_s2] sm:$0xff] }
 0x140   :  { %v230_v16 = vadd.f32 1.0, %v229_v6  ;;  %v237_v46 = vadd.f32 1.0, %v236_v36  ;;  %v523_v41 = vor.u32 4788187, %v522_v15  ;;  %v640_v47 = vshll.u32 %v1110_v13, 16 }
 0x141   :  { %v619_v52 = vshrl.u32 %v615_v12, 16  ;;  %v623_v21 = vsel %vm622_vm7, 1, %v805_v4  ;;  %v639_v33 = vmul.u32 %v635_v32, %v611_v39  ;;  %v526_v19 = vcvt.s32.f32 %v519_v22 }
 0x142   :  { %v238_v27 = vmul.f32 %v237_v46, %v1062_v11  ;;  %v247_v30 = vxor.u32 2147483648, %v230_v16  ;;  %v524_v11 = vand.u32 2147483647, %v523_v41  ;;  %v625_v26 = vadd.s32 %v623_v21, %v617_v18 }
 0x143   :  { %vm626_vm8 = vc.u32 %v624_v43, %v620_v10  ;;  %vm644_vm9 = vc.u32 %v636_v42, %v640_v47  ;;  %v642_v2 = vshll.u32 %v1116_v17, 16  ;;  %v646_v7 = vadd.s32 %v640_v47, %v636_v42 }
 0x144   :  { %v244_v50 = vxor.u32 2147483648, %v238_v27  ;;  %v248_v56 = vsel %vm246_vm3, %v247_v30, %v238_v27  ;;  %v627_v59 = vsel %vm626_vm8, 1, %v805_v4  ;;  %v527_v32 = vmul.f32 %v526_v19, %v524_v11 }
 0x145   :  { %v629_v62 = vadd.s32 %v627_v59, %v625_v26  ;;  %v645_v63 = vsel %vm644_vm9, 1, %v805_v4  ;;  %v749_v20 = vadd.s32 4294967169, %v1090_v54  ;;  %v597_v38 = vsel %vm593_vm12, %v1100_v55, %v1048_v28 }
 0x146   :  { %v245_v45 = vsel %vm243_vm2, %v230_v16, %v244_v50  ;;  %v647_v5 = vadd.s32 %v645_v63, %v639_v33  ;;  %v528_v36 = vxor.u32 2147483648, %v527_v32  ;;  %v599_v31 = vsel %vm595_vm14, %v1050_v29, %v598_v48 }
 0x147   :  { %v249_v39 = vsel %vm242_vm4, %v245_v45, %v248_v56  ;;  %v630_v44 = vadd.s32 %v629_v62, %v619_v52  ;;  %vm648_vm0 = vc.u32 %v646_v7, %v642_v2  ;;  %v251_v23 = vand.u32 2147483647, %v1021_v8 }
 0x148   :  { %v250_v1 = vsel %vm239_vm5, nan, %v249_v39  ;;  %v529_v12 = vsel %vm408_vm10, %v528_v36, %v527_v32  ;;  %v621_v16 = vshrl.u32 %v616_v14, 16  ;;  %v649_v46 = vsel %vm648_vm0, 1, %v805_v4 }
 0x149   :  { %v720_v6 = vadd.f32 %v716_v37, %v250_v1  ;;  %v261_v54 = vadd.s32 1, %v749_v20  ;;  %v532_v42 = vsel %vm1122_vm6, %v880_v35, %v529_v12  ;;  %v533_v28 = vsel %vm1122_vm6, 0, %v1096_v24 }
 0x14a   :  { %v641_v29 = vshrl.u32 %v1110_v13, 16  ;;  %v651_v55 = vadd.s32 %v649_v46, %v647_v5  ;;  %v534_v48 = vmul.f32 %v532_v42, %v532_v42  ;;  %v600_v22 = vsel %vm594_vm15, %v597_v38, %v599_v31 }
 0x14b   :  { %724 = vst [vmem:[#allocation2] sm:$0xff] %v720_v6  ;;  %v1163_v15 = vadd.s32 %v630_v44, %v621_v16  ;;  %vm262_vm10 = vcmp.gt.s32.totalorder %v261_v54, 0  ;;  %v643_v14 = vshrl.u32 %v1116_v17, 16  ;;  %v1166_v18 = vadd.s32 %v646_v7, %v642_v2 }
 0x14c   :  { %v652_v9 = vadd.s32 %v651_v55, %v641_v29  ;;  %v263_v25 = vsel %vm262_vm10, %v261_v54, 0  ;;  %v535_v27 = vmul.f32 -0.001358992, %v534_v48  ;;  %v542_v30 = vmul.f32 -0.00019511016, %v534_v48 }
 0x14d   :  { %v265_v10 = vand.u32 31, %v263_v25  ;;  %v550_v24 = vadd.s32 3, %v533_v28  ;;  %v654_v13 = vmul.u32 %v1035_v60, %v600_v22  ;;  %v258_v3 = vand.u32 8388607, %v251_v23 }
 0x14e   :  { %v653_v40 = vadd.s32 %v652_v9, %v643_v14  ;;  %v536_v41 = vadd.f32 0.041655596, %v535_v27  ;;  %v543_v43 = vadd.f32 0.008332121, %v542_v30  ;;  %vm656_vm11 = vc.u32 %v1163_v15, %v1166_v18 }
 0x14f   :  { %v1173_v17 = vsub.s32 32, %v265_v10  ;;  %v1175_v50 = vshrl.u32 %v263_v25, 5  ;;  %v268_v52 = vshll.u32 %v807_v49, %v265_v10  ;;  %v271_v21 = vshll.u32 %v808_v51, %v265_v10  ;;  %v718_v25 = vld [vmem:[%s1286_s2 + $0x10] sm:$0xff] }
 0x150   :  { %v657_v47 = vadd.s32 1, %v653_v40  ;;  %v537_v33 = vmul.f32 %v536_v41, %v534_v48  ;;  %v544_v11 = vmul.f32 %v543_v43, %v534_v48  ;;  %v277_v19 = vshll.u32 %v810_v58, %v265_v10 }
 0x151   :  { %v269_v60 = vshrl.u32 %v808_v51, %v1173_v17  ;;  %v272_v37 = vshrl.u32 %v809_v53, %v1173_v17  ;;  %v275_v45 = vshrl.u32 %v810_v58, %v1173_v17  ;;  %v278_v56 = vshrl.u32 %v811_v61, %v1173_v17 }
 0x152   :  { %v658_v26 = vsel %vm656_vm11, %v657_v47, %v653_v40  ;;  %v538_v59 = vadd.f32 -0.4999988, %v537_v33  ;;  %v545_v39 = vadd.f32 -0.16666654, %v544_v11  ;;  %v274_v62 = vshll.u32 %v809_v53, %v265_v10 }
 0x153   :  { %v659_v32 = vadd.s32 %v658_v26, %v654_v13  ;;  %v1189_v63 = vor.u32 %v269_v60, %v268_v52  ;;  %v1191_v51 = vor.u32 %v272_v37, %v271_v21  ;;  %v279_v1 = vor.u32 %v278_v56, %v277_v19 }
 0x154   :  { %v280_v2 = vshll.u32 %v811_v61, %v265_v10  ;;  %v539_v7 = vmul.f32 %v538_v59, %v534_v48  ;;  %v546_v5 = vmul.f32 %v545_v39, %v534_v48  ;;  %v281_v58 = vshrl.u32 %v812_v0, %v1173_v17 }
 0x155   :  { %v660_v6 = vadd.s32 536870912, %v659_v32  ;;  %v551_v36 = vand.u32 3, %v550_v24  ;;  %v259_v44 = vor.u32 8388608, %v258_v3  ;;  %v1196_v20 = vor.u32 %v275_v45, %v274_v62 }
 0x156   :  { %vm286_vm12 = vcmp.lt.s32.totalorder %v1175_v50, 4  ;;  %v540_v53 = vadd.f32 1.0, %v539_v7  ;;  %v547_v38 = vadd.f32 1.0, %v546_v5  ;;  %v282_v12 = vor.u32 %v281_v58, %v280_v2 }
 0x157   :  { %v1199_v31 = vshrl.u32 %v660_v6, 30  ;;  %vm283_vm13 = vcmp.lt.s32.totalorder %v1175_v50, 1  ;;  %vm285_vm14 = vcmp.lt.s32.totalorder %v1175_v50, 3  ;;  %v292_v61 = vsel %vm286_vm12, %v279_v1, 920167782 }
 0x158   :  { %v548_v16 = vmul.f32 %v547_v38, %v532_v42  ;;  %v557_v0 = vxor.u32 2147483648, %v540_v53  ;;  %v291_v54 = vsel %vm283_vm13, %v1189_v63, %v1191_v51  ;;  %vm552_vm15 = vcmp.lt.s32.totalorder %v551_v36, 2 }
 0x159   :  { %v662_v46 = vshll.u32 %v1199_v31, 30  ;;  %v293_v28 = vsel %vm285_vm14, %v1196_v20, %v292_v61  ;;  %v296_v29 = vsel %vm286_vm12, %v282_v12, 1326507024  ;;  %v1215_v55 = vshll.u32 %v259_v44, 8 }
 0x15a   :  { %v554_v48 = vxor.u32 2147483648, %v548_v16  ;;  %vm284_vm1 = vcmp.lt.s32.totalorder %v1175_v50, 2  ;;  %v295_v22 = vsel %vm283_vm13, %v1191_v51, %v1196_v20  ;;  %vm553_vm2 = vcmp.eq.s32.totalorder %v551_v36, 0 }
 0x15b   :  { %v663_v42 = vsub.s32 %v659_v32, %v662_v46  ;;  %vm556_vm3 = vcmp.eq.s32.totalorder %v551_v36, 2  ;;  %v294_v14 = vsel %vm284_vm1, %v291_v54, %v293_v28  ;;  %v297_v9 = vsel %vm285_vm14, %v279_v1, %v296_v29 }
 0x15c   :  { %v555_v27 = vsel %vm553_vm2, %v540_v53, %v554_v48  ;;  %v558_v30 = vsel %vm556_vm3, %v557_v0, %v548_v16  ;;  %vm549_vm5 = vweird.f32 %v880_v35  ;;  %v298_v40 = vsel %vm284_vm1, %v295_v22, %v297_v9 }
 0x15d   :  { %vm664_vm4 = vcmp.lt.s32.totalorder %v663_v42, 0  ;;  %v665_v10 = vsub.s32 0, %v663_v42  ;;  %v559_v24 = vsel %vm552_vm15, %v555_v27, %v558_v30  ;;  %v300_v13 = vand.u32 65535, %v1215_v55 }
 0x15e   :  { %v560_v3 = vsel %vm549_vm5, nan, %v559_v24  ;;  %v302_v43 = vand.u32 65535, %v298_v40  ;;  %v325_v47 = vshrl.u32 %v294_v14, 16  ;;  %v303_v33 = vshrl.u32 %v298_v40, 16 }
 0x15f   :  { %v666_v41 = vsel %vm664_vm4, %v665_v10, %v663_v42  ;;  %v722_v52 = vadd.f32 %v718_v25, %v560_v3  ;;  %v324_v11 = vand.u32 65535, %v294_v14  ;;  %v301_v60 = vshrl.u32 %v1215_v55, 16 }
 0x160   :  { %v667_v21 = vclz %v666_v41  ;;  %v305_v35 = vmul.u32 %v303_v33, %v300_v13  ;;  %v655_v26 = vadd.s32 %v1166_v18, %v1163_v15  ;;  %v327_v45 = vmul.u32 %v325_v47, %v300_v13 }
 0x161   :  { %726 = vst [vmem:[#allocation2 + $0x10] sm:$0xff] %v722_v52  ;;  %v306_v37 = vmul.u32 %v302_v43, %v301_v60  ;;  %v304_v56 = vmul.u32 %v302_v43, %v300_v13  ;;  %v326_v39 = vmul.u32 %v324_v11, %v300_v13  ;;  %v307_v62 = vmul.u32 %v303_v33, %v301_v60 }
 0x162   :  { %v756_v19 = vadd.s32 4294967294, %v667_v21  ;;  %v308_v59 = vshll.u32 %v305_v35, 16  ;;  %v328_v1 = vmul.u32 %v324_v11, %v301_v60  ;;  %v330_v2 = vshll.u32 %v327_v45, 16 }
 0x163   :  { %v329_v6 = vmul.u32 %v325_v47, %v301_v60  ;;  %v310_v36 = vshll.u32 %v306_v37, 16  ;;  %v288_v29 = vsel %vm286_vm12, %v1196_v20, 2102212464  ;;  %v309_v48 = vshrl.u32 %v305_v35, 16 }
 0x164   :  { %vm757_vm6 = vcmp.lt.s32.totalorder %v756_v19, 0  ;;  %vm312_vm7 = vc.u32 %v304_v56, %v308_v59  ;;  %v314_v53 = vadd.s32 %v308_v59, %v304_v56  ;;  %vm334_vm8 = vc.u32 %v326_v39, %v330_v2 }
 0x165   :  { %v670_v32 = vsel %vm757_vm6, 0, %v756_v19  ;;  %v313_v44 = vsel %vm312_vm7, 1, %v805_v4  ;;  %v332_v12 = vshll.u32 %v328_v1, 16  ;;  %v335_v61 = vsel %vm334_vm8, 1, %v805_v4 }
 0x166   :  { %v671_v7 = vsub.s32 32, %v670_v32  ;;  %v675_v5 = vsub.s32 4294967266, %v670_v32  ;;  %v672_v58 = vshll.u32 %v663_v42, %v670_v32  ;;  %v315_v38 = vadd.s32 %v313_v44, %v307_v62 }
 0x167   :  { %vm316_vm9 = vc.u32 %v314_v53, %v310_v36  ;;  %v336_v16 = vadd.s32 %v330_v2, %v326_v39  ;;  %v337_v28 = vadd.s32 %v335_v61, %v329_v6  ;;  %v267_v14 = vshrl.u32 %v807_v49, %v1173_v17 }
 0x168   :  { %v673_v15 = vshrl.u32 %v655_v26, %v671_v7  ;;  %v676_v18 = vadd.s32 127, %v675_v5  ;;  %v317_v54 = vsel %vm316_vm9, 1, %v805_v4  ;;  %v311_v25 = vshrl.u32 %v306_v37, 16 }
 0x169   :  { %v319_v42 = vadd.s32 %v317_v54, %v315_v38  ;;  %vm338_vm0 = vc.u32 %v336_v16, %v332_v12  ;;  %v331_v30 = vshrl.u32 %v327_v45, 16  ;;  %v287_v13 = vsel %vm283_vm13, %v267_v14, %v1189_v63 }
 0x16a   :  { %v674_v0 = vor.u32 %v673_v15, %v672_v58  ;;  %v677_v46 = vshll.u32 %v676_v18, 23  ;;  %v339_v9 = vsel %vm338_vm0, 1, %v805_v4  ;;  %v289_v20 = vsel %vm285_vm14, %v1191_v51, %v288_v29 }
 0x16b   :  { %v320_v27 = vadd.s32 %v319_v42, %v309_v48  ;;  %v341_v10 = vadd.s32 %v339_v9, %v337_v28  ;;  %v333_v41 = vshrl.u32 %v328_v1, 16  ;;  %v340_v17 = vadd.s32 %v336_v16, %v332_v12 }
 0x16c   :  { %v678_v22 = vor.u32 4788187, %v677_v46  ;;  %v681_v40 = vcvt.s32.f32 %v674_v0  ;;  %v290_v4 = vsel %vm284_vm1, %v287_v13, %v289_v20  ;;  %vm563_vm11 = vcmp.lt.s32.totalorder %v913_v34, 0  ;;  %v719_v46 = vld [vmem:[%s1286_s2 + $0x18] sm:$0xff] }
 0x16d   :  { %v321_v3 = vadd.s32 %v320_v27, %v311_v25  ;;  %v342_v43 = vadd.s32 %v341_v10, %v331_v30  ;;  %vm1257_vm12 = vcmp.le.f32.partialorder %v561_v57, 0.7853982  ;;  %v344_v33 = vmul.u32 %v1215_v55, %v290_v4 }
 0x16e   :  { %v679_v24 = vand.u32 2147483647, %v678_v22  ;;  %v685_v11 = vsub.s32 4, %v1199_v31  ;;  %vm704_vm14 = vweird.f32 %v913_v34  ;;  %vm253_vm4 = vcmp.lt.s32.totalorder %v1021_v8, 0 }
 0x16f   :  { %v343_v47 = vadd.s32 %v342_v43, %v333_v41  ;;  %vm346_vm10 = vc.u32 %v321_v3, %v340_v17  ;;  %v345_v42 = vadd.s32 %v340_v17, %v321_v3  ;;  %vm252_vm5 = vcmp.le.f32.partialorder %v251_v23, 0.7853982 }
 0x170   :  { %v682_v49 = vmul.f32 %v681_v40, %v679_v24  ;;  %v686_v57 = vsel %vm563_vm11, %v685_v11, %v1199_v31  ;;  %vm394_vm9 = vweird.f32 %v1021_v8 }
 0x171   :  { %v347_v21 = vadd.s32 1, %v343_v47  ;;  %v688_v55 = vsel %vm1257_vm12, 0, %v686_v57 }
 0x172   :  { %v683_v52 = vxor.u32 2147483648, %v682_v49  ;;  %v705_v6 = vadd.s32 3, %v688_v55 }
 0x173   :  { %v348_v60 = vsel %vm346_vm10, %v347_v21, %v343_v47 }
 0x174   :  { %v684_v51 = vsel %vm563_vm11, %v683_v52, %v682_v49  ;;  %v349_v35 = vadd.s32 %v348_v60, %v344_v33  ;;  %v706_v18 = vand.u32 3, %v705_v6 }
 0x175   :  { %v687_v50 = vsel %vm1257_vm12, %v913_v34, %v684_v51 }
 0x176   :  { %v689_v19 = vmul.f32 %v687_v50, %v687_v50  ;;  %v350_v45 = vadd.s32 536870912, %v349_v35  ;;  %vm708_vm15 = vcmp.eq.s32.totalorder %v706_v18, 0  ;;  %vm711_vm1 = vcmp.eq.s32.totalorder %v706_v18, 2 }
 0x177   :  { %vm707_vm3 = vcmp.lt.s32.totalorder %v706_v18, 2 }
 0x178   :  { %v690_v26 = vmul.f32 -0.001358992, %v689_v19  ;;  %v697_v37 = vmul.f32 -0.00019511016, %v689_v19  ;;  %v351_v39 = vshrl.u32 %v350_v45, 30 }
 0x17a   :  { %v691_v56 = vadd.f32 0.041655596, %v690_v26  ;;  %v698_v59 = vadd.f32 0.008332121, %v697_v37  ;;  %v352_v1 = vshll.u32 %v351_v39, 30  ;;  %v375_v49 = vsub.s32 4, %v351_v39 }
 0x17c   :  { %v692_v32 = vmul.f32 %v691_v56, %v689_v19  ;;  %v699_v62 = vmul.f32 %v698_v59, %v689_v19  ;;  %v353_v5 = vsub.s32 %v349_v35, %v352_v1  ;;  %v376_v21 = vsel %vm253_vm4, %v375_v49, %v351_v39  ;;  %v717_v39 = vld [vmem:[%s1286_s2 + $0x8] sm:$0xff] }
 0x17d   :  { %v378_v33 = vsel %vm252_vm5, 0, %v376_v21 }
 0x17e   :  { %v693_v2 = vadd.f32 -0.4999988, %v692_v32  ;;  %v700_v7 = vadd.f32 -0.16666654, %v699_v62  ;;  %vm354_vm13 = vcmp.lt.s32.totalorder %v353_v5, 0  ;;  %v355_v44 = vsub.s32 0, %v353_v5 }
 0x17f   :  { %v395_v35 = vadd.s32 3, %v378_v33 }
 0x180   :  { %v694_v58 = vmul.f32 %v693_v2, %v689_v19  ;;  %v701_v36 = vmul.f32 %v700_v7, %v689_v19  ;;  %v356_v31 = vsel %vm354_vm13, %v355_v44, %v353_v5 }
 0x181   :  { %v357_v38 = vclz %v356_v31  ;;  %v396_v57 = vand.u32 3, %v395_v35 }
 0x182   :  { %v695_v53 = vadd.f32 1.0, %v694_v58  ;;  %v702_v15 = vadd.f32 1.0, %v701_v36 }
 0x183   :  { %v750_v16 = vadd.s32 4294967294, %v357_v38  ;;  %vm398_vm6 = vcmp.eq.s32.totalorder %v396_v57, 0  ;;  %vm401_vm7 = vcmp.eq.s32.totalorder %v396_v57, 2  ;;  %vm397_vm8 = vcmp.lt.s32.totalorder %v396_v57, 2 }
 0x184   :  { %v703_v12 = vmul.f32 %v702_v15, %v687_v50  ;;  %v712_v61 = vxor.u32 2147483648, %v695_v53 }
 0x185   :  { %vm751_vm2 = vcmp.lt.s32.totalorder %v750_v16, 0 }
 0x186   :  { %v709_v0 = vxor.u32 2147483648, %v703_v12  ;;  %v713_v28 = vsel %vm711_vm1, %v712_v61, %v703_v12  ;;  %v360_v29 = vsel %vm751_vm2, 0, %v750_v16 }
 0x187   :  { %v361_v22 = vsub.s32 32, %v360_v29  ;;  %v365_v14 = vsub.s32 4294967266, %v360_v29  ;;  %v362_v27 = vshll.u32 %v353_v5, %v360_v29 }
 0x188   :  { %v710_v54 = vsel %vm708_vm15, %v695_v53, %v709_v0 }
 0x189   :  { %v714_v48 = vsel %vm707_vm3, %v710_v54, %v713_v28  ;;  %v363_v30 = vshrl.u32 %v345_v42, %v361_v22  ;;  %v366_v34 = vadd.s32 127, %v365_v14 }
 0x18a   :  { %v715_v9 = vsel %vm704_vm14, nan, %v714_v48 }
 0x18b   :  { %v723_v25 = vadd.f32 %v719_v46, %v715_v9  ;;  %v364_v10 = vor.u32 %v363_v30, %v362_v27  ;;  %v367_v24 = vshll.u32 %v366_v34, 23 }
 0x18d   :  { %727 = vst [vmem:[#allocation2 + $0x18] sm:$0xff] %v723_v25  ;;  %v368_v40 = vor.u32 4788187, %v367_v24  ;;  %v371_v20 = vcvt.s32.f32 %v364_v10 }
 0x18f   :  { %v369_v13 = vand.u32 2147483647, %v368_v40 }
 0x191   :  { %v372_v41 = vmul.f32 %v371_v20, %v369_v13 }
 0x193   :  { %v373_v43 = vxor.u32 2147483648, %v372_v41 }
 0x195   :  { %v374_v3 = vsel %vm253_vm4, %v373_v43, %v372_v41 }
 0x196   :  { %v377_v17 = vsel %vm252_vm5, %v1021_v8, %v374_v3 }
 0x197   :  { %v379_v4 = vmul.f32 %v377_v17, %v377_v17 }
 0x199   :  { %v380_v47 = vmul.f32 -0.001358992, %v379_v4  ;;  %v387_v52 = vmul.f32 -0.00019511016, %v379_v4 }
 0x19b   :  { %v381_v63 = vadd.f32 0.041655596, %v380_v47  ;;  %v388_v51 = vadd.f32 0.008332121, %v387_v52 }
 0x19d   :  { %v382_v11 = vmul.f32 %v381_v63, %v379_v4  ;;  %v389_v50 = vmul.f32 %v388_v51, %v379_v4 }
 0x19f   :  { %v383_v60 = vadd.f32 -0.4999988, %v382_v11  ;;  %v390_v19 = vadd.f32 -0.16666654, %v389_v50 }
 0x1a1   :  { %v384_v26 = vmul.f32 %v383_v60, %v379_v4  ;;  %v391_v37 = vmul.f32 %v390_v19, %v379_v4 }
 0x1a3   :  { %v385_v45 = vadd.f32 1.0, %v384_v26  ;;  %v392_v23 = vadd.f32 1.0, %v391_v37 }
 0x1a5   :  { %v393_v56 = vmul.f32 %v392_v23, %v377_v17  ;;  %v402_v59 = vxor.u32 2147483648, %v385_v45 }
 0x1a7   :  { %v399_v55 = vxor.u32 2147483648, %v393_v56  ;;  %v403_v62 = vsel %vm401_vm7, %v402_v59, %v393_v56 }
 0x1a9   :  { %v400_v32 = vsel %vm398_vm6, %v385_v45, %v399_v55 }
 0x1aa   :  { %v404_v1 = vsel %vm397_vm8, %v400_v32, %v403_v62 }
 0x1ab   :  { %v405_v2 = vsel %vm394_vm9, nan, %v404_v1 }
 0x1ac   :  { %v721_v7 = vadd.f32 %v717_v39, %v405_v2 }
 0x1ae   :  { %725 = vst [vmem:[#allocation2 + $0x8] sm:$0xff] %v721_v7 }
 0x1af   :  { %740 = dma.vmem_to_hbm [thread:$0]  %s733_s30, 512, %s735_s6, [#allocation3], %s814_s9, %s814_s9, %s815_s10  }
 0x1b0   :  { %802 = dma.done.wait [#allocation3], 512  }
 0x1b1   :  { %803 = vsyncadd [#allocation3], 4294966784 }
 0x1b2   :  { %745 = vsyncpa [#allocation3], 1 }

</bundles_post_ra>
